<compile_context>
chip_gen: v6e
topology: v6e:2x2x1
jax: 0.10.0
libtpu: 0.0.40
codegen_flags: <defaults>
</compile_context>

<pallas_src>
import jax
import jax.numpy as jnp
from jax.experimental import pallas as pl
from jax.experimental.pallas import tpu as pltpu


def _gated_conv_kernel(x_ref, w_ref, b_ref, gated_ref, stats_ref):
    # x_ref    : (1, TH+2, (W+2)*Cin) bf16  padded, lane-dense input row tile
    # w_ref    : (3, (W+2)*Cin, 2*W*Cout) bf16  block-Toeplitz fused weights
    # b_ref    : (1, 2*W*Cout) f32          fused per-(w, channel) biases
    # gated_ref: (TH, W*Cout) bf16          pre-BN gated activations
    # stats_ref: (1, 2, W*Cout) f32         per-tile [column sum, centered M2]
    TH, WC = gated_ref.shape

    x2 = x_ref[0]                                     # (TH+2, (W+2)*Cin) bf16

    # Three lane-dense MXU matmuls (one per ky tap row), f32 accumulation.
    pre = (jnp.dot(x2[0:TH, :], w_ref[0], preferred_element_type=jnp.float32)
           + jnp.dot(x2[1:TH + 1, :], w_ref[1], preferred_element_type=jnp.float32)
           + jnp.dot(x2[2:TH + 2, :], w_ref[2], preferred_element_type=jnp.float32)
           + b_ref[...])                              # (TH, 2*WC) f32

    feat_pre = pre[:, :WC]                            # conv_f pre-activation
    mask_pre = pre[:, WC:]                            # conv_m pre-activation

    # features = ELU(conv_f(x))  (alpha = 1.0), f32 on the VPU/EUP.
    feat = jnp.where(feat_pre > 0.0, feat_pre,
                     jnp.exp(jnp.minimum(feat_pre, 0.0)) - 1.0)
    # mask = sigmoid(conv_m(x)) via tanh: one EUP op instead of exp + recip.
    mask = 0.5 * jnp.tanh(0.5 * mask_pre) + 0.5
    out = feat * mask                                 # (TH, WC) f32

    # Per-tile, per-column BatchNorm partials: sum and centered M2 (stable
    # Chan-style combine happens in the wrapper).  Lane-dense (WC = 128) rows.
    col_sum = jnp.sum(out, axis=0, keepdims=True)     # (1, WC)
    col_mu = col_sum * (1.0 / TH)
    dev = out - col_mu
    col_m2 = jnp.sum(dev * dev, axis=0, keepdims=True)
    stats_ref[:, 0:1, :] = col_sum.reshape(1, 1, WC)
    stats_ref[:, 1:2, :] = col_m2.reshape(1, 1, WC)

    # bf16 intermediate: halves the HBM write + the re-read by the BN finalize.
    gated_ref[...] = out.astype(gated_ref.dtype)


def _fuse_mask_params(wdw, bdw, wpw, bpw):
    """Fold depthwise3x3 -> 1x1 into an equivalent dense 3x3 conv (wm, bm)."""
    Cin, Cout = wpw.shape
    wm = wdw.reshape(3, 3, Cin)[..., None] * wpw[None, None, :, :]   # (3,3,Cin,Cout)
    bm = bdw.reshape(1, Cin) @ wpw + bpw.reshape(1, Cout)            # (1,Cout)
    return wm, bm


def _toeplitz_weights(wf, wm, W):
    """Block-Toeplitz weights: (3, (W+2)*Cin, 2*W*Cout) bf16, features | mask."""
    Cin, Cout = wf.shape[2], wf.shape[3]
    # S[kx, p, w] = 1 iff p == w + kx  (input width position feeding output w).
    S = jnp.stack([jnp.eye(W + 2, W, k=-kx, dtype=jnp.float32) for kx in range(3)])
    wf_big = jnp.einsum('xpw,yxcd->ypcwd', S, wf).reshape(3, (W + 2) * Cin, W * Cout)
    wm_big = jnp.einsum('xpw,yxcd->ypcwd', S, wm).reshape(3, (W + 2) * Cin, W * Cout)
    return jnp.concatenate([wf_big, wm_big], axis=-1).astype(jnp.bfloat16)


def _pick_row_tile(H, W, Cin, Cout, budget_bytes=8 * 1024 * 1024):
    """Largest row tile (divisor of H, sublane-friendly) under the VMEM budget."""
    pc, wc = (W + 2) * Cin, W * Cout

    def vmem_bytes(th):
        io = 2 * ((th + 2) * pc * 2 + th * wc * 2 + 2 * wc * 4)  # double-buffered blocks
        tmp = 4 * th * 2 * wc * 4                                 # f32 pre/feat/mask/out
        wgt = 3 * pc * 2 * wc * 2 + 2 * wc * 4                    # resident weights+bias
        return io + tmp + wgt

    cands = [H] + [th for th in range(H - 1, 0, -1) if H % th == 0 and th % 16 == 0]
    for th in cands:
        if vmem_bytes(th) <= budget_bytes:
            return th
    return cands[-1]
    # TODO(synk): for images too large for any row tile, stream overlapping halo
    # windows from HBM with memory_space=pl.ANY + pltpu.make_async_copy instead.


@jax.jit
def gated_block_ds(x_nchw, wf, bf, wdw, bdw, wpw, bpw, gamma, beta):
    """x_nchw: (N, Cin, H, W) f32  ->  (N, Cout, H, W) f32."""
    N, Cin, H, W = x_nchw.shape
    Cout = wf.shape[-1]
    WC = W * Cout
    PC = (W + 2) * Cin

    TH = _pick_row_tile(H, W, Cin, Cout)
    n_th = H // TH
    n_tiles = N * n_th

    # NCHW -> NHWC, bf16, 1-px zero halo, lane-dense (W+2)*Cin presentation.
    x_nhwc = jnp.transpose(x_nchw, (0, 2, 3, 1)).astype(jnp.bfloat16)
    xp = jnp.pad(x_nhwc, ((0, 0), (1, 1), (1, 1), (0, 0)))
    if n_th == 1:
        xt = xp.reshape(N, H + 2, PC)                 # free row-major reshape
    else:
        # Fallback: overlapping row windows carrying their own halo.
        # TODO(synk): replace with pl.ANY + manual double-buffered DMA to avoid
        # duplicating the halo rows in HBM.
        xt = jnp.stack([xp[:, t * TH:t * TH + TH + 2] for t in range(n_th)],
                       axis=1).reshape(n_tiles, TH + 2, PC)

    wm, bm = _fuse_mask_params(wdw, bdw, wpw, bpw)
    w_big = _toeplitz_weights(wf, wm, W)              # (3, PC, 2*WC) bf16
    b_row = jnp.concatenate([jnp.tile(bf.reshape(Cout), W),
                             jnp.tile(bm.reshape(Cout), W)]
                            ).reshape(1, 2 * WC).astype(jnp.float32)

    gated, stats = pl.pallas_call(
        _gated_conv_kernel,
        out_shape=(jax.ShapeDtypeStruct((N * H, WC), jnp.bfloat16),
                   jax.ShapeDtypeStruct((n_tiles, 2, WC), jnp.float32)),
        grid=(n_tiles,),
        in_specs=[
            pl.BlockSpec((1, TH + 2, PC), lambda i: (i, 0, 0)),
            pl.BlockSpec((3, PC, 2 * WC), lambda i: (0, 0, 0)),
            pl.BlockSpec((1, 2 * WC), lambda i: (0, 0)),
        ],
        out_specs=(
            pl.BlockSpec((TH, WC), lambda i: (i, 0)),
            pl.BlockSpec((1, 2, WC), lambda i: (i, 0, 0)),
        ),
        compiler_params=pltpu.CompilerParams(
            dimension_semantics=("parallel",),
            vmem_limit_bytes=32 * 1024 * 1024),
    )(xt, w_big, b_row)

    # Global (N,H,W) BatchNorm statistics: stable parallel (Chan) combine of
    # the per-tile, per-column (count=TH) partials.  Tiny XLA math.
    stats3 = stats.reshape(n_tiles, 2, W, Cout)
    sum_g = stats3[:, 0].reshape(n_tiles * W, Cout)
    m2_g = stats3[:, 1].reshape(n_tiles * W, Cout)
    mean_g = sum_g / float(TH)
    mean = jnp.mean(mean_g, axis=0)                               # equal counts
    m2 = jnp.sum(m2_g, axis=0) + TH * jnp.sum((mean_g - mean) ** 2, axis=0)
    var = m2 / float(N * H * W)                                   # biased (train mode)
    inv_std = jax.lax.rsqrt(var + 1e-5)
    scale = gamma.reshape(Cout) * inv_std
    shift = beta.reshape(Cout) - mean * scale

    # BN affine + NHWC->NCHW transpose fused by XLA: one read of the bf16
    # intermediate, one f32 output write (no extra Pallas pass / round trip).
    out_nhwc = gated.reshape(N, H, W, Cout).astype(jnp.float32) * scale + shift
    return jnp.transpose(out_nhwc, (0, 3, 1, 2))


# ----------------------------- references -----------------------------------

def _reference_fused(x_nchw, wf, bf, wm, bm, gamma, beta):
    """Same math path as the kernel (bf16 operands, bf16 gated intermediate)."""
    N, Cin, H, W = x_nchw.shape
    Cout = wf.shape[-1]
    x = jnp.transpose(x_nchw, (0, 2, 3, 1))
    xp = jnp.pad(x, ((0, 0), (1, 1), (1, 1), (0, 0))).astype(jnp.bfloat16)
    patches = jnp.concatenate(
        [xp[:, ky:ky + H, kx:kx + W, :] for ky in range(3) for kx in range(3)],
        axis=-1).reshape(N * H * W, 9 * Cin)
    w_full = jnp.concatenate([wf.reshape(9 * Cin, Cout), wm.reshape(9 * Cin, Cout)],
                             axis=1).astype(jnp.bfloat16)
    b_full = jnp.concatenate([bf.reshape(1, Cout), bm.reshape(1, Cout)], axis=1)
    pre = jnp.dot(patches, w_full, preferred_element_type=jnp.float32) + b_full
    out = jax.nn.elu(pre[:, :Cout]) * jax.nn.sigmoid(pre[:, Cout:])
    mean = jnp.mean(out, axis=0)
    var = jnp.var(out, axis=0)
    scale = gamma.reshape(Cout) * jax.lax.rsqrt(var + 1e-5)
    shift = beta.reshape(Cout) - mean * scale
    out_bf = out.astype(jnp.bfloat16).astype(jnp.float32)   # kernel stores bf16
    y = out_bf * scale + shift
    return jnp.transpose(y.reshape(N, H, W, Cout), (0, 3, 1, 2))


def _reference_f32(x_nchw, wf, bf, wdw, bdw, wpw, bpw, gamma, beta):
    """Independent f32 module-semantics reference -> loose check (bf16 kernel)."""
    N, Cin, H, W = x_nchw.shape
    Cout = wf.shape[-1]
    x = jnp.transpose(x_nchw, (0, 2, 3, 1))
    xp = jnp.pad(x, ((0, 0), (1, 1), (1, 1), (0, 0)))
    acc_f = jnp.zeros((N, H, W, Cout), jnp.float32)
    acc_dw = jnp.zeros((N, H, W, Cin), jnp.float32)
    for ky in range(3):
        for kx in range(3):
            patch = xp[:, ky:ky + H, kx:kx + W, :]
            acc_f = acc_f + jnp.einsum('nhwc,cd->nhwd', patch, wf[ky, kx])
            acc_dw = acc_dw + patch * wdw[ky * 3 + kx]
    feat = jax.nn.elu(acc_f + bf)
    mask = jax.nn.sigmoid(jnp.einsum('nhwc,cd->nhwd', acc_dw + bdw, wpw) + bpw)
    out = feat * mask
    mean = jnp.mean(out, axis=(0, 1, 2), keepdims=True)
    var = jnp.mean((out - mean) ** 2, axis=(0, 1, 2), keepdims=True)
    out = (out - mean) * jax.lax.rsqrt(var + 1e-5) * gamma.reshape(1, 1, 1, Cout) \
        + beta.reshape(1, 1, 1, Cout)
    return jnp.transpose(out, (0, 3, 1, 2))


if __name__ == "__main__":
    key = jax.random.PRNGKey(0)
    N, Cin, Cout, H, W = 2, 4, 8, 16, 16

    ks = jax.random.split(key, 9)
    x = jax.random.normal(ks[0], (N, Cin, H, W), jnp.float32)

    # Synthetic parameters (shapes follow the PyTorch __init__):
    wf = 0.2 * jax.random.normal(ks[1], (3, 3, Cin, Cout), jnp.float32)   # conv_f.weight
    bf = 0.1 * jax.random.normal(ks[2], (1, Cout), jnp.float32)           # conv_f.bias
    wdw = 0.2 * jax.random.normal(ks[3], (9, Cin), jnp.float32)           # conv_m[0].weight (depthwise 3x3)
    bdw = 0.1 * jax.random.normal(ks[4], (1, Cin), jnp.float32)           # conv_m[0].bias
    wpw = 0.2 * jax.random.normal(ks[5], (Cin, Cout), jnp.float32)        # conv_m[1].weight (1x1)
    bpw = 0.1 * jax.random.normal(ks[6], (1, Cout), jnp.float32)          # conv_m[1].bias
    gamma = 1.0 + 0.1 * jax.random.normal(ks[7], (1, Cout), jnp.float32)  # norm.weight
    beta = 0.1 * jax.random.normal(ks[8], (1, Cout), jnp.float32)         # norm.bias

    out = gated_block_ds(x, wf, bf, wdw, bdw, wpw, bpw, gamma, beta)
    out = jax.block_until_ready(out)
    assert out.shape == (N, Cout, H, W)

    # Check A (tight): identical math path in pure JAX (bf16 fused conv, exact
    # sigmoid, bf16 gated intermediate); only accumulation order / hardware
    # tanh rounding differ.
    wm, bm = _fuse_mask_params(wdw, bdw, wpw, bpw)
    ref_a = _reference_fused(x, wf, bf, wm, bm, gamma, beta)
    assert jnp.allclose(out, ref_a, rtol=2e-2, atol=2e-2), "mismatch vs fused reference"

    # Check B (loose): independent f32 module-semantics reference; tolerance is
    # loosened because the kernel uses bf16 MXU inputs and a bf16 intermediate.
    ref_b = _reference_f32(x, wf, bf, wdw, bdw, wpw, bpw, gamma, beta)
    assert jnp.allclose(out, ref_b, rtol=1e-1, atol=1.5e-1), "mismatch vs f32 reference"

    # TODO(synk): median_blur path (median_filter=True) not implemented; module default is False.
    # Note: BatchNorm2d running_mean/running_var buffer updates are not emitted (forward activation only).
    print("KERNEL_OK")
</pallas_src>

<mosaic_0001>
module attributes {stable_mosaic.version = 11 : i64} {
  func.func @_gated_conv_kernel(%arg0: i32, %arg1: memref<1x18x72xbf16, #tpu.memory_space<vmem>>, %arg2: memref<3x72x256xbf16, #tpu.memory_space<vmem>>, %arg3: memref<1x256xf32, #tpu.memory_space<vmem>>, %arg4: memref<16x128xbf16, #tpu.memory_space<vmem>>, %arg5: memref<1x2x128xf32, #tpu.memory_space<vmem>>) attributes {dimension_semantics = [#tpu.dimension_semantics<parallel>], iteration_bounds = array<i64: 2>, scalar_prefetch = 0 : i64, scratch_operands = 0 : i64, tpu.core_type = #tpu.core_type<tc>, window_params = [{transform_indices = @transform_0, window_bounds = array<i64: 1, 18, 72>}, {pipeline_mode = #tpu.pipeline_mode<synchronous>, transform_indices = @transform_1, window_bounds = array<i64: 3, 72, 256>}, {pipeline_mode = #tpu.pipeline_mode<synchronous>, transform_indices = @transform_2, window_bounds = array<i64: 1, 256>}, {transform_indices = @transform_3, window_bounds = array<i64: 16, 128>}, {transform_indices = @transform_4, window_bounds = array<i64: 1, 2, 128>}]} {
    %c0 = arith.constant 0 : index
    %c0_0 = arith.constant 0 : index
    %c0_1 = arith.constant 0 : index
    %0 = vector.load %arg1[%c0, %c0_0, %c0_1] : memref<1x18x72xbf16, #tpu.memory_space<vmem>>, vector<1x18x72xbf16>
    %1 = vector.shape_cast %0 : vector<1x18x72xbf16> to vector<18x72xbf16>
    %2 = vector.extract_strided_slice %1 {offsets = [0, 0], sizes = [16, 72], strides = [1, 1]} : vector<18x72xbf16> to vector<16x72xbf16>
    %c0_2 = arith.constant 0 : index
    %c0_3 = arith.constant 0 : index
    %c0_4 = arith.constant 0 : index
    %3 = vector.load %arg2[%c0_2, %c0_3, %c0_4] : memref<3x72x256xbf16, #tpu.memory_space<vmem>>, vector<1x72x256xbf16>
    %4 = vector.shape_cast %3 : vector<1x72x256xbf16> to vector<72x256xbf16>
    %cst = arith.constant dense<0.000000e+00> : vector<16x256xf32>
    %5 = tpu.matmul %2, %4, %cst {dimension_numbers = #tpu.dot_dimension_numbers<[1], [0], [0], [1], [0, 0, 1, 1], [], []>} : vector<16x72xbf16>, vector<72x256xbf16>, vector<16x256xf32> -> vector<16x256xf32>
    %6 = vector.extract_strided_slice %1 {offsets = [1, 0], sizes = [16, 72], strides = [1, 1]} : vector<18x72xbf16> to vector<16x72xbf16>
    %c1 = arith.constant 1 : index
    %c0_5 = arith.constant 0 : index
    %c0_6 = arith.constant 0 : index
    %7 = vector.load %arg2[%c1, %c0_5, %c0_6] : memref<3x72x256xbf16, #tpu.memory_space<vmem>>, vector<1x72x256xbf16>
    %8 = vector.shape_cast %7 : vector<1x72x256xbf16> to vector<72x256xbf16>
    %cst_7 = arith.constant dense<0.000000e+00> : vector<16x256xf32>
    %9 = tpu.matmul %6, %8, %cst_7 {dimension_numbers = #tpu.dot_dimension_numbers<[1], [0], [0], [1], [0, 0, 1, 1], [], []>} : vector<16x72xbf16>, vector<72x256xbf16>, vector<16x256xf32> -> vector<16x256xf32>
    %10 = arith.addf %5, %9 : vector<16x256xf32>
    %11 = vector.extract_strided_slice %1 {offsets = [2, 0], sizes = [16, 72], strides = [1, 1]} : vector<18x72xbf16> to vector<16x72xbf16>
    %c2 = arith.constant 2 : index
    %c0_8 = arith.constant 0 : index
    %c0_9 = arith.constant 0 : index
    %12 = vector.load %arg2[%c2, %c0_8, %c0_9] : memref<3x72x256xbf16, #tpu.memory_space<vmem>>, vector<1x72x256xbf16>
    %13 = vector.shape_cast %12 : vector<1x72x256xbf16> to vector<72x256xbf16>
    %cst_10 = arith.constant dense<0.000000e+00> : vector<16x256xf32>
    %14 = tpu.matmul %11, %13, %cst_10 {dimension_numbers = #tpu.dot_dimension_numbers<[1], [0], [0], [1], [0, 0, 1, 1], [], []>} : vector<16x72xbf16>, vector<72x256xbf16>, vector<16x256xf32> -> vector<16x256xf32>
    %15 = arith.addf %10, %14 : vector<16x256xf32>
    %c0_11 = arith.constant 0 : index
    %c0_12 = arith.constant 0 : index
    %16 = vector.load %arg3[%c0_11, %c0_12] : memref<1x256xf32, #tpu.memory_space<vmem>>, vector<1x256xf32>
    %17 = vector.broadcast %16 : vector<1x256xf32> to vector<16x256xf32>
    %18 = arith.addf %15, %17 : vector<16x256xf32>
    %19 = vector.extract_strided_slice %18 {offsets = [0, 0], sizes = [16, 128], strides = [1, 1]} : vector<16x256xf32> to vector<16x128xf32>
    %20 = vector.extract_strided_slice %18 {offsets = [0, 128], sizes = [16, 128], strides = [1, 1]} : vector<16x256xf32> to vector<16x128xf32>
    %cst_13 = arith.constant 0.000000e+00 : f32
    %21 = vector.broadcast %cst_13 : f32 to vector<16x128xf32>
    %22 = arith.cmpf ogt, %19, %21 : vector<16x128xf32>
    %cst_14 = arith.constant 0.000000e+00 : f32
    %23 = vector.broadcast %cst_14 : f32 to vector<16x128xf32>
    %24 = arith.minimumf %19, %23 : vector<16x128xf32>
    %25 = math.exp %24 : vector<16x128xf32>
    %cst_15 = arith.constant 1.000000e+00 : f32
    %26 = vector.broadcast %cst_15 : f32 to vector<16x128xf32>
    %27 = arith.subf %25, %26 : vector<16x128xf32>
    %28 = arith.select %22, %19, %27 : vector<16x128xi1>, vector<16x128xf32>
    %cst_16 = arith.constant 5.000000e-01 : f32
    %29 = vector.broadcast %cst_16 : f32 to vector<16x128xf32>
    %30 = arith.mulf %29, %20 : vector<16x128xf32>
    %31 = math.tanh %30 : vector<16x128xf32>
    %cst_17 = arith.constant 5.000000e-01 : f32
    %32 = vector.broadcast %cst_17 : f32 to vector<16x128xf32>
    %33 = arith.mulf %32, %31 : vector<16x128xf32>
    %cst_18 = arith.constant 5.000000e-01 : f32
    %34 = vector.broadcast %cst_18 : f32 to vector<16x128xf32>
    %35 = arith.addf %33, %34 : vector<16x128xf32>
    %36 = arith.mulf %28, %35 : vector<16x128xf32>
    %cst_19 = arith.constant dense<0.000000e+00> : vector<128xf32>
    %37 = vector.multi_reduction <add>, %36, %cst_19 [0] : vector<16x128xf32> to vector<128xf32>
    %38 = vector.shape_cast %37 : vector<128xf32> to vector<1x128xf32>
    %cst_20 = arith.constant 6.250000e-02 : f32
    %39 = vector.broadcast %cst_20 : f32 to vector<1x128xf32>
    %40 = arith.mulf %38, %39 : vector<1x128xf32>
    %41 = vector.broadcast %40 : vector<1x128xf32> to vector<16x128xf32>
    %42 = arith.subf %36, %41 : vector<16x128xf32>
    %43 = arith.mulf %42, %42 : vector<16x128xf32>
    %cst_21 = arith.constant dense<0.000000e+00> : vector<128xf32>
    %44 = vector.multi_reduction <add>, %43, %cst_21 [0] : vector<16x128xf32> to vector<128xf32>
    %45 = vector.shape_cast %44 : vector<128xf32> to vector<1x128xf32>
    %46 = vector.shape_cast %38 : vector<1x128xf32> to vector<1x1x128xf32>
    %c0_22 = arith.constant 0 : index
    %c0_23 = arith.constant 0 : index
    %c0_24 = arith.constant 0 : index
    %47 = vector.load %arg5[%c0_22, %c0_23, %c0_24] : memref<1x2x128xf32, #tpu.memory_space<vmem>>, vector<1x1x128xf32>
    tpu.vector_store %arg5[%c0_22, %c0_23, %c0_24], %46 {strides = array<i32>} : memref<1x2x128xf32, #tpu.memory_space<vmem>>, vector<1x1x128xf32>,
    %48 = vector.shape_cast %45 : vector<1x128xf32> to vector<1x1x128xf32>
    %c0_25 = arith.constant 0 : index
    %c1_26 = arith.constant 1 : index
    %c0_27 = arith.constant 0 : index
    %49 = vector.load %arg5[%c0_25, %c1_26, %c0_27] : memref<1x2x128xf32, #tpu.memory_space<vmem>>, vector<1x1x128xf32>
    tpu.vector_store %arg5[%c0_25, %c1_26, %c0_27], %48 {strides = array<i32>} : memref<1x2x128xf32, #tpu.memory_space<vmem>>, vector<1x1x128xf32>,
    %50 = arith.truncf %36 : vector<16x128xf32> to vector<16x128xbf16>
    %c0_28 = arith.constant 0 : index
    %c0_29 = arith.constant 0 : index
    %51 = vector.load %arg4[%c0_28, %c0_29] : memref<16x128xbf16, #tpu.memory_space<vmem>>, vector<16x128xbf16>
    tpu.vector_store %arg4[%c0_28, %c0_29], %50 {strides = array<i32>} : memref<16x128xbf16, #tpu.memory_space<vmem>>, vector<16x128xbf16>,
    return
  }
  func.func @transform_0(%arg0: i32) -> (i32, i32, i32) {
    %c0_i32 = arith.constant 0 : i32
    %c0_i32_0 = arith.constant 0 : i32
    %c0_i32_1 = arith.constant 0 : i32
    return %arg0, %c0_i32, %c0_i32_0 : i32, i32, i32
  }
  func.func @transform_1(%arg0: i32) -> (i32, i32, i32) {
    %c0_i32 = arith.constant 0 : i32
    %c0_i32_0 = arith.constant 0 : i32
    %c0_i32_1 = arith.constant 0 : i32
    %c0_i32_2 = arith.constant 0 : i32
    return %c0_i32, %c0_i32_0, %c0_i32_1 : i32, i32, i32
  }
  func.func @transform_2(%arg0: i32) -> (i32, i32) {
    %c0_i32 = arith.constant 0 : i32
    %c0_i32_0 = arith.constant 0 : i32
    %c0_i32_1 = arith.constant 0 : i32
    return %c0_i32, %c0_i32_0 : i32, i32
  }
  func.func @transform_3(%arg0: i32) -> (i32, i32) {
    %c0_i32 = arith.constant 0 : i32
    %c0_i32_0 = arith.constant 0 : i32
    return %arg0, %c0_i32 : i32, i32
  }
  func.func @transform_4(%arg0: i32) -> (i32, i32, i32) {
    %c0_i32 = arith.constant 0 : i32
    %c0_i32_0 = arith.constant 0 : i32
    %c0_i32_1 = arith.constant 0 : i32
    return %arg0, %c0_i32, %c0_i32_0 : i32, i32, i32
  }
}

</mosaic_0001>

<bundles_post_ra>
// kernel: mul.15
= control target key start
LH: loop header
LB: loop body
LE: loop exit
PB: predicated region body
PF: predicated region fallthrough
CT: control target
= control target key end

     0   :  { %vm8_vm0 = vcmask 23552   ;;  %s58_s8 = smov 122   ;;  %s84_s0 = inlined_call_operand.vmem [shape: f32[9,4], index: 0, kind: input, shape index: {}]   ;;  %s85_s1 = inlined_call_operand.vmem [shape: f32[3,3,4], index: 1, kind: output, shape index: {}]  }
   0x1   :  { %v5_v0 = vld [vmem:[%s84_s0] sm:$0xf]  ;;  %s57_s0 = smov 125  }
   0x2   :  { %6 = vst [vmem:[#allocation1] sm:$0xf] %v5_v0 }
   0x9   :  { %v10_v1 = vld [vmem:[#allocation1] sm:$0xf]  }
   0xa   :  { %v7_v2 = vld [vmem:[#allocation1] sm:$0xf]   ;;  %11 = vrot.lane.b32.xlu0 %v10_v1, %s57_s0 }
   0xb   :  { %9 = vst.msk [vmem:[#allocation0] ss:$8 sm:$0xf] %vm8_vm0, %v7_v2   ;;  %v16_v3 = vld [vmem:[#allocation1] sm:$0xf]  }
   0xe   :  { %17 = vrot.lane.b32.xlu0 %v16_v3, %s58_s8 }
  0x7c   :  { %v12_v4 = vpop.permute.xlu0 %11  }
  0x7d   :  { %15 = vst.msk [vmem:[#allocation0 + $0x1] ss:$8 sm:$0xf] %vm8_vm0, %v12_v4  }
  0x80   :  { %v18_v5 = vpop.permute.xlu0 %17  }
  0x81   :  { %21 = vst.msk [vmem:[#allocation0 + $0x2] ss:$8 sm:$0xf] %vm8_vm0, %v18_v5  }
  0x88   :  { %v26_v6 = vld [vmem:[#allocation0] sm:$0xf]  ;;  %v31_v7 = vld [vmem:[#allocation0 + $0x8] sm:$0xf]  ;;  %v37_v8 = vld [vmem:[#allocation0 + $0x10] sm:$0xf] }
  0x89   :  { %29 = vst [vmem:[%s85_s1] sm:$0xf] %v26_v6  ;;  %52 = vst [vmem:[%s85_s1 + $0x4] sm:$0xf] %v31_v7  ;;  %v44_v9 = vld [vmem:[#allocation0 + $0x18] sm:$0xf] }
  0x8a   :  { %53 = vst [vmem:[%s85_s1 + $0x8] sm:$0xf] %v37_v8  ;;  %54 = vst [vmem:[%s85_s1 + $0xc] sm:$0xf] %v44_v9 }

// kernel: tile.14
= control target key start
LH: loop header
LB: loop body
LE: loop exit
PB: predicated region body
PF: predicated region fallthrough
CT: control target
= control target key end

     0   :  { %s28_s0 = inlined_call_operand.vmem [shape: f32[8], index: 0, kind: input, shape index: {}]   ;;  %s29_s1 = inlined_call_operand.vmem [shape: f32[16,8], index: 1, kind: output, shape index: {}]  }
   0x1   :  { %v4_v0 = vld [vmem:[%s28_s0] ss:$0 sm:$0xff] }
   0x2   :  { %5 = vst [vmem:[%s29_s1] sm:$0xff] %v4_v0  ;;  %8 = vst [vmem:[%s29_s1 + $0x8] sm:$0xff] %v4_v0 }

// kernel: tile.15
= control target key start
LH: loop header
LB: loop body
LE: loop exit
PB: predicated region body
PF: predicated region fallthrough
CT: control target
= control target key end

     0   :  { %s133_s10 = smov 120   ;;  %s134_s11 = smov 104   ;;  %vm3_vm0 = vcmask 64512   ;;  %vm9_vm1 = vcmask 1048512   ;;  %vm15_vm2 = vcmask 982912   ;;  %vm21_vm3 = vcmask 917312   ;;  %s209_s0 = inlined_call_operand.vmem [shape: f32[16,8], index: 0, kind: input, shape index: {}]   ;;  %s210_s1 = inlined_call_operand.vmem [shape: f32[128], index: 1, kind: output, shape index: {}]  }
   0x1   :  { %v103_v0 = vld [vmem:[%s209_s0 + $0xf] sm:$0x1]   ;;  %v105_v1 = vld [vmem:[%s209_s0 + $0xd] sm:$0x1]   ;;  %v104_v2 = vld [vmem:[%s209_s0 + $0xe] sm:$0x1]  }
   0x2   :  { %7 = vrot.lane.b32.xlu0 %v103_v0, %s133_s10  ;;  %19 = vrot.lane.b32.xlu1 %v105_v1, %s134_s11  ;;  %v106_v3 = vld [vmem:[%s209_s0 + $0xc] sm:$0x1]   ;;  %s135_s16 = smov 112   ;;  %s136_s17 = smov 96   ;;  %v107_v4 = vld [vmem:[%s209_s0 + $0xb] sm:$0x1]  }
   0x3   :  { %v108_v5 = vld [vmem:[%s209_s0 + $0xa] sm:$0x1]   ;;  %v2_v6 = vld [vmem:[%s209_s0] sm:$0x1]   ;;  %s137_s24 = smov 88   ;;  %s138_s25 = smov 80  }
   0x4   :  { %4 = vst.msk [vmem:[#allocation0] sm:$0x1] %vm3_vm0, %v2_v6   ;;  %v109_v7 = vld [vmem:[%s209_s0 + $0x9] sm:$0x1]   ;;  %v110_v8 = vld [vmem:[%s209_s0 + $0x8] sm:$0x1]  }
   0x5   :  { %s139_s30 = smov 72   ;;  %s140_s2 = smov 64   ;;  %v111_v9 = vld [vmem:[%s209_s0 + $0x7] sm:$0x1]   ;;  %v112_v10 = vld [vmem:[%s209_s0 + $0x6] sm:$0x1]  }
   0x6   :  { %13 = vrot.lane.b32.xlu0 %v104_v2, %s135_s16  ;;  %25 = vrot.lane.b32.xlu1 %v106_v3, %s136_s17  ;;  %s141_s7 = smov 56   ;;  %s142_s8 = smov 48   ;;  %v113_v11 = vld [vmem:[%s209_s0 + $0x5] sm:$0x1]   ;;  %v114_v12 = vld [vmem:[%s209_s0 + $0x4] sm:$0x1]  }
   0x7   :  { %s143_s13 = smov 40   ;;  %s144_s14 = smov 32   ;;  %v115_v13 = vld [vmem:[%s209_s0 + $0x3] sm:$0x1]   ;;  %v116_v14 = vld [vmem:[%s209_s0 + $0x2] sm:$0x1]  }
   0x8   :  { %s145_s19 = smov 24   ;;  %s146_s20 = smov 16   ;;  %v117_v15 = vld [vmem:[%s209_s0 + $0x1] sm:$0x1]   ;;  %vm27_vm4 = vcmask 851712   ;;  %vm33_vm5 = vcmask 786112  }
   0x9   :  { %s147_s0 = smov 8   ;;  %vm39_vm6 = vcmask 720512   ;;  %vm45_vm7 = vcmask 654912   ;;  %vm51_vm8 = vcmask 589312   ;;  %vm57_vm9 = vcmask 523712  }
   0xa   :  { %31 = vrot.lane.b32.xlu0 %v107_v4, %s137_s24  ;;  %37 = vrot.lane.b32.xlu1 %v108_v5, %s138_s25  ;;  %vm63_vm10 = vcmask 458112   ;;  %vm69_vm11 = vcmask 392512   ;;  %vm75_vm12 = vcmask 326912   ;;  %vm81_vm13 = vcmask 261312  }
   0xb   :  { %vm87_vm14 = vcmask 195712   ;;  %vm93_vm15 = vcmask 130112  }
   0xe   :  { %43 = vrot.lane.b32.xlu0 %v109_v7, %s139_s30  ;;  %49 = vrot.lane.b32.xlu1 %v110_v8, %s140_s2 }
  0x12   :  { %55 = vrot.lane.b32.xlu0 %v111_v9, %s141_s7  ;;  %61 = vrot.lane.b32.xlu1 %v112_v10, %s142_s8 }
  0x16   :  { %67 = vrot.lane.b32.xlu0 %v113_v11, %s143_s13  ;;  %73 = vrot.lane.b32.xlu1 %v114_v12, %s144_s14 }
  0x1a   :  { %79 = vrot.lane.b32.xlu0 %v115_v13, %s145_s19  ;;  %85 = vrot.lane.b32.xlu1 %v116_v14, %s146_s20 }
  0x1e   :  { %91 = vrot.lane.b32.xlu0 %v117_v15, %s147_s0 }
  0x74   :  { %v8_v16 = vpop.permute.xlu0 %7   ;;  %v20_v17 = vpop.permute.xlu1 %19  }
  0x75   :  { %10 = vst.msk [vmem:[#allocation0] sm:$0x1] %vm9_vm1, %v8_v16  }
  0x78   :  { %v14_v18 = vpop.permute.xlu0 %13   ;;  %v26_v19 = vpop.permute.xlu1 %25  }
  0x79   :  { %16 = vst.msk [vmem:[#allocation0] sm:$0x1] %vm15_vm2, %v14_v18  }
  0x7a   :  { %22 = vst.msk [vmem:[#allocation0] sm:$0x1] %vm21_vm3, %v20_v17  }
  0x7b   :  { %28 = vst.msk [vmem:[#allocation0] sm:$0x1] %vm27_vm4, %v26_v19  }
  0x7c   :  { %v32_v20 = vpop.permute.xlu0 %31   ;;  %v38_v21 = vpop.permute.xlu1 %37  }
  0x7d   :  { %34 = vst.msk [vmem:[#allocation0] sm:$0x1] %vm33_vm5, %v32_v20  }
  0x7e   :  { %40 = vst.msk [vmem:[#allocation0] sm:$0x1] %vm39_vm6, %v38_v21  }
  0x80   :  { %v44_v22 = vpop.permute.xlu0 %43   ;;  %v50_v23 = vpop.permute.xlu1 %49  }
  0x81   :  { %46 = vst.msk [vmem:[#allocation0] sm:$0x1] %vm45_vm7, %v44_v22  }
  0x82   :  { %52 = vst.msk [vmem:[#allocation0] sm:$0x1] %vm51_vm8, %v50_v23  }
  0x84   :  { %v56_v24 = vpop.permute.xlu0 %55   ;;  %v62_v25 = vpop.permute.xlu1 %61  }
  0x85   :  { %58 = vst.msk [vmem:[#allocation0] sm:$0x1] %vm57_vm9, %v56_v24  }
  0x86   :  { %64 = vst.msk [vmem:[#allocation0] sm:$0x1] %vm63_vm10, %v62_v25  }
  0x88   :  { %v68_v26 = vpop.permute.xlu0 %67   ;;  %v74_v27 = vpop.permute.xlu1 %73  }
  0x89   :  { %70 = vst.msk [vmem:[#allocation0] sm:$0x1] %vm69_vm11, %v68_v26  }
  0x8a   :  { %76 = vst.msk [vmem:[#allocation0] sm:$0x1] %vm75_vm12, %v74_v27  }
  0x8c   :  { %v80_v28 = vpop.permute.xlu0 %79   ;;  %v86_v29 = vpop.permute.xlu1 %85  }
  0x8d   :  { %82 = vst.msk [vmem:[#allocation0] sm:$0x1] %vm81_vm13, %v80_v28  }
  0x8e   :  { %88 = vst.msk [vmem:[#allocation0] sm:$0x1] %vm87_vm14, %v86_v29  }
  0x90   :  { %v92_v30 = vpop.permute.xlu0 %91  }
  0x91   :  { %94 = vst.msk [vmem:[#allocation0] sm:$0x1] %vm93_vm15, %v92_v30  }
  0x98   :  { %v99_v31 = vld [vmem:[#allocation0] sm:$0x1] }
  0x99   :  { %102 = vst [vmem:[%s210_s1] sm:$0x1] %v99_v31 }

// kernel: gated_block_ds.1
= control target key start
LH: loop header
LB: loop body
LE: loop exit
PB: predicated region body
PF: predicated region fallthrough
CT: control target
= control target key end

     0   :  { %s894_s15 = smov 0   ;;  %s1019_s0 = inlined_call_operand.vmem [shape: bf16[2,18,72], index: 0, kind: input, shape index: {}]   ;;  %s1020_s1 = inlined_call_operand.vmem [shape: bf16[3,72,256], index: 1, kind: input, shape index: {}]   ;;  %s1021_s2 = inlined_call_operand.vmem [shape: f32[1,256], index: 2, kind: input, shape index: {}]   ;;  %s1022_s3 = inlined_call_operand.vmem [shape: bf16[32,128], index: 3, kind: output, shape index: {0}]   ;;  %s1023_s4 = inlined_call_operand.vmem [shape: f32[2,2,128], index: 4, kind: output, shape index: {1}]  }
   0x1 LB: > { %s900_s16 = sadd.s32 4294967295, %s866_s15   ;;  %p724_p0 = scmp.ge.s32.totalorder %s866_s15, 1  ;;  %s866_s15 = sphi %s894_s15, %s15_s15  }
   0x2   : > { %p165_p1 = scmp.lt.s32.totalorder %s866_s15, 3 }
   0x4   : > { %p166_p2 = pnand %p724_p0, %p165_p1 }
   0x5   : > { %p195_p3 = scmp.lt.s32.totalorder (!%p166_p2), %s900_s16, 1  ;;  %s726_s6 = sshll.u32 (!%p166_p2), %s900_s16, 1 }
   0x6   : > { %169 = sbr.rel (%p166_p2) target bundleno = 315 (0x13b), region = 32  ;;  %p201_p4 = scmp.lt.s32.totalorder (!%p166_p2), %s726_s6, 3 }
   0xb   : > { %v737_v0 = vld [vmem:[%s1020_s1 + $0x88] sm:$0xff]  ;;  %vm303_vm0 = vcmask 1043456   ;;  %v222_v1 = vld [vmem:[%s1020_s1 + $0x40] sm:$0xff]  ;;  %v868_v7 = vmov 0   ;;  %v814_v8 = vld [vmem:[%s1020_s1 + $0x34] ss:$8 sps:$4 sm:$0xff]   ;;  %v566_v50 = vlaneseq }
   0xc   : > { %v749_v2 = vcombine.high %v737_v0, %v737_v0  ;;  %v761_v3 = vcombine.high %v222_v1, %v222_v1  ;;  %v748_v4 = vcombine.low %v737_v0, %v737_v0  ;;  %v760_v5 = vcombine.low %v222_v1, %v222_v1  ;;  %v812_v6 = vld [vmem:[%s1020_s1 + $0x7c] ss:$8 sps:$4 sm:$0xff]   ;;  %342 = vmatprep.mubr.bf16.mxu0 %v868_v7  ;;  %s920_s25 = scalar_select %p195_p3, %s900_s16, 1  ;;  %v816_v11 = vld [vmem:[%s1020_s1 + $0x78] ss:$8 sps:$4 sm:$0xff]   ;;  %v772_v28 = vld [vmem:[%s1020_s1 + $0xd0] sm:$0xff] }
   0xd   : > { %438 = vmatprep.mubr.bf16.mxu1 %v868_v7  ;;  %v817_v12 = vld [vmem:[%s1020_s1 + $0x30] ss:$8 sps:$4 sm:$0xff]   ;;  %v818_v13 = vld [vmem:[%s1020_s1 + $0x6c] ss:$8 sps:$4 sm:$0xff]   ;;  %v823_v16 = vld [vmem:[%s1020_s1 + $0x20] ss:$8 sps:$4 sm:$0xff]   ;;  %v782_v33 = vcombine.high %v772_v28, %v772_v28  ;;  %v781_v34 = vcombine.low %v772_v28, %v772_v28 }
   0xe   : > { %750 = vmatprep.subr.msk.bf16.mxu0 %vm303_vm0, %v749_v2  ;;  %762 = vmatprep.subr.msk.bf16.mxu1 %vm303_vm0, %v761_v3  ;;  %v305_v9 = vsel %vm303_vm0, %v748_v4, 0  ;;  %v401_v10 = vsel %vm303_vm0, %v760_v5, 0  ;;  %v820_v14 = vld [vmem:[%s1020_s1 + $0x24] ss:$8 sps:$4 sm:$0xff]   ;;  %s798_s8 = smul.u32 12, %s920_s25  ;;  %vm299_vm2 = vcmask 588800  }
   0xf   : > { %317 = vmatpush1.bf16.msra.mxu0 %v305_v9  ;;  %413 = vmatpush1.bf16.msra.mxu1 %v401_v10  ;;  %v822_v15 = vld [vmem:[%s1020_s1 + $0x68] ss:$8 sps:$4 sm:$0xff]   ;;  %v824_v17 = vld [vmem:[%s1020_s1 + $0x5c] ss:$8 sps:$4 sm:$0xff]   ;;  %v828_v19 = vld [vmem:[%s1020_s1 + $0x58] ss:$8 sps:$4 sm:$0xff]  }
  0x10   : > { %318 = vmatprep.subr.bf16.mxu0 %v812_v6  ;;  %414 = vmatprep.subr.bf16.mxu1 %v814_v8  ;;  %v826_v18 = vld [vmem:[%s1020_s1 + $0x14] ss:$8 sps:$4 sm:$0xff]   ;;  %s199_s21 = scalar_lea.vmem %s1019_s0, %s798_s8  ;;  %v829_v20 = vld [vmem:[%s1020_s1 + $0x10] ss:$8 sps:$4 sm:$0xff]   ;;  %v832_v24 = vld [vmem:[%s1020_s1 + $0x4] ss:$8 sps:$4 sm:$0xff]  }
  0x11   : > { %v830_v21 = vld [vmem:[%s1020_s1 + $0x4c] ss:$8 sps:$4 sm:$0xff]   ;;  %v836_v22 = vld [vmem:[%s199_s21] sm:$0xff]   ;;  %v837_v23 = vld [vmem:[%s199_s21 + $0x8] ss:$0 sps:$4 sm:$0x11]  }
  0x12   : > { %v243_v25 = vshrl.u32 %v836_v22, 16  ;;  %v245_v26 = vshll.u32 %v836_v22, 16  ;;  %v250_v27 = vshll.u32 %v837_v23, 16  ;;  %v834_v29 = vld [vmem:[%s1020_s1 + $0x48] ss:$8 sps:$4 sm:$0xff]   ;;  %v512_v37 = vsel %vm303_vm0, %v781_v34, 0 }
  0x13   : > { %319 = vmatpush1.bf16.msra.mxu0 %v816_v11  ;;  %415 = vmatpush1.bf16.msra.mxu1 %v817_v12  ;;  %v835_v30 = vld [vmem:[%s1020_s1] ss:$8 sps:$4 sm:$0xff]   ;;  %vm241_vm1 = vsmask.f32 7424  ;;  %v842_v38 = vld [vmem:[%s1020_s1 + $0xc4] ss:$8 sps:$4 sm:$0xff]  }
  0x14   : > { %320 = vmatprep.subr.bf16.mxu0 %v818_v13  ;;  %416 = vmatprep.subr.bf16.mxu1 %v820_v14  ;;  %v247_v31 = vrot.slane %v245_v26, 1  ;;  %v252_v32 = vrot.slane %v250_v27, 1  ;;  %v840_v39 = vld [vmem:[%s1020_s1 + $0xc0] ss:$8 sps:$4 sm:$0xff]   ;;  %v845_v40 = vld [vmem:[%s1020_s1 + $0xb4] ss:$8 sps:$4 sm:$0xff]  }
  0x15   : > { %v843_v41 = vld [vmem:[%s1020_s1 + $0xb0] ss:$8 sps:$4 sm:$0xff]   ;;  %v848_v42 = vld [vmem:[%s1020_s1 + $0xa4] ss:$8 sps:$4 sm:$0xff]   ;;  %v846_v43 = vld [vmem:[%s1020_s1 + $0xa0] ss:$8 sps:$4 sm:$0xff]  }
  0x16   : > { %v248_v35 = vor.u32 %v247_v31, %v243_v25  ;;  %v851_v44 = vld [vmem:[%s1020_s1 + $0x94] ss:$8 sps:$4 sm:$0xff]   ;;  %v849_v45 = vld [vmem:[%s1020_s1 + $0x90] ss:$8 sps:$4 sm:$0xff]   ;;  %v460_v46 = vrot.slane %v836_v22, 1  ;;  %v461_v47 = vrot.slane %v837_v23, 1 }
  0x17   : > { %321 = vmatpush1.bf16.msra.mxu0 %v822_v15  ;;  %417 = vmatpush1.bf16.msra.mxu1 %v823_v16  ;;  %vm459_vm3 = vcmask 1046528   ;;  %v567_v53 = vshrl.u32 %v566_v50, 7  ;;  %v564_v57 = vld [vmem:[%s1021_s2] sm:$0x3]  ;;  %s1025_s6 = smov (!%p201_p4, %s726_s6), 3  ;;  %s728_s10 = sshll.u32 %s920_s25, 1 }
  0x18   : > { %322 = vmatprep.subr.bf16.mxu0 %v824_v17  ;;  %418 = vmatprep.subr.bf16.mxu1 %v826_v18  ;;  %v253_v36 = vsel %vm241_vm1, %v248_v35, %v252_v32  ;;  %v462_v48 = vsel %vm459_vm3, %v460_v46, %v461_v47  ;;  %s727_s7 = sshll.u32 %s1025_s6, 2  ;;  %s209_s13 = scalar_lea.vmem %s1023_s4, %s728_s10 }
  0x19   : > { %v568_v56 = vsub.s32 0, %v567_v53  ;;  %v572_v58 = vsub.s32 1, %v567_v53  ;;  %s204_s9 = scalar_lea.vmem %s1022_s3, %s727_s7 }
  0x1b   : > { %323 = vmatpush1.bf16.msra.mxu0 %v828_v19  ;;  %419 = vmatpush1.bf16.msra.mxu1 %v829_v20  ;;  %v569_v62 = vrot.slane %v564_v57, %v568_v56  ;;  %v573_v2 = vrot.slane %v564_v57, %v572_v58 }
  0x1c   : > { %324 = vmatprep.subr.bf16.mxu0 %v830_v21  ;;  %420 = vmatprep.subr.bf16.mxu1 %v832_v24 }
  0x1f   : > { %325 = vmatpush1.bf16.msra.mxu0 %v834_v29  ;;  %421 = vmatpush1.bf16.msra.mxu1 %v835_v30 }
  0x20   : > { %783 = vmatprep.subr.msk.bf16.mxu0 %vm303_vm0, %v782_v33 }
  0x22   : > { %751 = vmatmul.mubr.msk.bf16.vlgmr.msra.gmra.mxu0 %vm299_vm2, %v253_v36  ;;  %763 = vmatmul.mubr.msk.bf16.vlgmr.msra.gmra.mxu1 %vm299_vm2, %v836_v22 }
  0x23   : > { %524 = vmatpush1.bf16.msra.mxu0 %v512_v37  ;;  %549 = vmatprep.mubr.bf16.mxu0 %v868_v7 }
  0x24   : > { %525 = vmatprep.subr.bf16.mxu0 %v842_v38 }
  0x27   : > { %526 = vmatpush1.bf16.msra.mxu0 %v840_v39 }
  0x28   : > { %527 = vmatprep.subr.bf16.mxu0 %v845_v40 }
  0x2b   : > { %528 = vmatpush1.bf16.msra.mxu0 %v843_v41 }
  0x2c   : > { %529 = vmatprep.subr.bf16.mxu0 %v848_v42 }
  0x2f   : > { %530 = vmatpush1.bf16.msra.mxu0 %v846_v43 }
  0x30   : > { %531 = vmatprep.subr.bf16.mxu0 %v851_v44 }
  0x33   : > { %532 = vmatpush1.bf16.msra.mxu0 %v849_v45 }
  0x36   : > { %784 = vmatmul.mubr.msk.bf16.vlgmr.msra.gmra.mxu0 %vm299_vm2, %v462_v48 }
  0xe2   : > { %v344_v49 = vpop.f32.mrf.mxu0  ;;  %v440_v51 = vpop.f32.mrf.mxu1 }
  0xe3   : > { %v441_v61 = vadd.f32 %v440_v51, %v344_v49 }
  0xe4   : > { %v346_v52 = vpop.f32.mrf.mxu0  ;;  %v442_v54 = vpop.f32.mrf.mxu1 }
  0xe5   : > { %v443_v0 = vadd.f32 %v442_v54, %v346_v52 }
  0xe6   : > { %v348_v55 = vpop.f32.mrf.mxu0  ;;  %v444_v59 = vpop.f32.mrf.mxu1 }
  0xe7   : > { %v445_v5 = vadd.f32 %v444_v59, %v348_v55 }
  0xe8   : > { %v350_v60 = vpop.f32.mrf.mxu0  ;;  %v446_v3 = vpop.f32.mrf.mxu1 }
  0xe9   : > { %v447_v9 = vadd.f32 %v446_v3, %v350_v60 }
  0xf6   : > { %v551_v63 = vpop.f32.mrf.mxu0 }
  0xf7   : > { %v560_v1 = vadd.f32 %v551_v63, %v441_v61 }
  0xf8   : > { %v553_v4 = vpop.f32.mrf.mxu0 }
  0xf9   : > { %v576_v6 = vadd.f32 %v569_v62, %v560_v1  ;;  %v561_v7 = vadd.f32 %v553_v4, %v443_v0 }
  0xfa   : > { %v555_v8 = vpop.f32.mrf.mxu0 }
  0xfb   : > { %v582_v10 = vmin.f32 %v576_v6, 0.0  ;;  %v577_v11 = vadd.f32 %v573_v2, %v561_v7  ;;  %v562_v12 = vadd.f32 %v555_v8, %v445_v5  ;;  %vm580_vm4 = vcmp.gt.f32.partialorder %v576_v6, 0.0 }
  0xfc   : > { %v557_v13 = vpop.f32.mrf.mxu0 }
  0xfd   : > { %v584_v14 = vmul.f32 1.442695, %v582_v10  ;;  %v592_v15 = vmul.f32 0.5, %v577_v11  ;;  %v578_v16 = vadd.f32 %v569_v62, %v562_v12  ;;  %v563_v17 = vadd.f32 %v557_v13, %v447_v9 }
  0xff   : > { %852 = vpow2.f32 %v584_v14  ;;  %v583_v18 = vmin.f32 %v578_v16, 0.0  ;;  %v579_v19 = vadd.f32 %v573_v2, %v563_v17  ;;  %vm581_vm5 = vcmp.gt.f32.partialorder %v578_v16, 0.0 }
 0x100   : > { %854 = vtanh.f32 %v592_v15 }
 0x101   : > { %v586_v20 = vmul.f32 1.442695, %v583_v18  ;;  %v593_v21 = vmul.f32 0.5, %v579_v19 }
 0x103   : > { %856 = vpow2.f32 %v586_v20 }
 0x104   : > { %858 = vtanh.f32 %v593_v21 }
 0x10c   : > { %v853_v22 = vpop.eup %852 }
 0x10d   : > { %v855_v23 = vpop.eup %854  ;;  %v785_v25 = vadd.f32 -1.0, %v853_v22 }
 0x10e   : > { %v596_v24 = vmul.f32 0.5, %v855_v23 }
 0x10f   : > { %v590_v31 = vsel %vm580_vm4, %v576_v6, %v785_v25 }
 0x110   : > { %v857_v26 = vpop.eup %856  ;;  %v598_v29 = vadd.f32 0.5, %v596_v24 }
 0x111   : > { %v859_v27 = vpop.eup %858  ;;  %v786_v28 = vadd.f32 -1.0, %v857_v26 }
 0x112   : > { %v597_v30 = vmul.f32 0.5, %v859_v27  ;;  %v600_v34 = vmul.f32 %v598_v29, %v590_v31 }
 0x113   : > { %v591_v32 = vsel %vm581_vm5, %v578_v16, %v786_v28 }
 0x114   : > { %v599_v33 = vadd.f32 0.5, %v597_v30 }
 0x116   : > { %v601_v35 = vmul.f32 %v599_v33, %v591_v32 }
 0x118   : > { %v602_v36 = vadd.f32 %v601_v35, %v600_v34  ;;  %v796_v37 = vpack.c.bf16 %v601_v35, %v600_v34 }
 0x11a   : > { %v603_v38 = vrot.slane %v602_v36, 4  ;;  %797 = vst [vmem:[%s204_s9] sm:$0xff] %v796_v37  }
 0x11c   : > { %v604_v39 = vadd.f32 %v603_v38, %v602_v36 }
 0x11e   : > { %v605_v40 = vrot.slane %v604_v39, 2 }
 0x120   : > { %v606_v41 = vadd.f32 %v605_v40, %v604_v39 }
 0x122   : > { %v607_v42 = vrot.slane %v606_v41, 1 }
 0x124   : > { %v608_v43 = vadd.f32 %v607_v42, %v606_v41 }
 0x126   : > { %v609_v44 = vmul.f32 0.0625, %v608_v43  ;;  %621 = vst [vmem:[%s209_s13] sm:$0x1] %v608_v43 }
 0x128   : > { %v610_v45 = vsub.f32 %v600_v34, %v609_v44  ;;  %v611_v46 = vsub.f32 %v601_v35, %v609_v44 }
 0x12a   : > { %v612_v47 = vmul.f32 %v610_v45, %v610_v45  ;;  %v613_v48 = vmul.f32 %v611_v46, %v611_v46 }
 0x12c   : > { %v614_v49 = vadd.f32 %v613_v48, %v612_v47 }
 0x12e   : > { %v615_v50 = vrot.slane %v614_v49, 4 }
 0x130   : > { %v616_v51 = vadd.f32 %v615_v50, %v614_v49 }
 0x132   : > { %v617_v52 = vrot.slane %v616_v51, 2 }
 0x134   : > { %v618_v53 = vadd.f32 %v617_v52, %v616_v51 }
 0x136   : > { %v619_v54 = vrot.slane %v618_v53, 1 }
 0x138   : > { %v620_v55 = vadd.f32 %v619_v54, %v618_v53 }
 0x13a   : > { %622 = vst [vmem:[%s209_s13 + $0x1] sm:$0x1] %v620_v55 }
 0x13b PF: > { %s15_s15 = sadd.s32 1, %s866_s15  }
 0x13c   : > { %p12_p5 = scmp.ge.s32.totalorder %s15_s15, 4  }
 0x13e   :  { %14 = sbr.rel (!%p12_p5) target bundleno = 1 (0x1), region = 76 }

</bundles_post_ra>
